<compile_context>
chip_gen: v6e
topology: v6e:2x2x1
jax: 0.10.0
libtpu: 0.0.40
codegen_flags: <defaults>
</compile_context>

<pallas_src>
import numpy as np
import jax
import jax.numpy as jnp
from jax.experimental import pallas as pl
from jax.experimental.pallas import tpu as pltpu


# ----------------------------- Pallas kernel --------------------------------
def _conv1x1_kernel(w_ref, x_ref, o_ref):
    # w_ref: [C_out, C_in]   x_ref: [C_in, ts_hw]   o_ref: [C_out, ts_hw]
    o_ref[...] = jnp.dot(
        w_ref[...], x_ref[...], preferred_element_type=jnp.float32
    ).astype(o_ref.dtype)


def illumination_forward(x_nchw, weight_oc, *, ts_target=1024):
    """Forward pass of IlluminationLayer (NCHW-native, no relayouts).

    x_nchw:    [N, C_in, H, W]   (PyTorch NCHW convention)
    weight_oc: [C_out, C_in]     (squeezed 1x1 conv weight, no bias)
    returns:   [N, C_out, H, W]
    """
    N, C_in, H, W = x_nchw.shape
    C_out = weight_oc.shape[0]
    HW = H * W

    # Free reshape: keep channel-major layout, just flatten spatial.
    x3d = x_nchw.reshape(N, C_in, HW)

    # Spatial (lane) tile: multiple of 128 for lane-dense loads/stores, or the
    # full spatial extent when it is small.  Ragged last block handled by cdiv.
    if HW >= 128:
        ts = min(ts_target, ((HW + 127) // 128) * 128)
    else:
        ts = HW
    grid = (N, pl.cdiv(HW, ts))

    itemsize = jnp.dtype(x_nchw.dtype).itemsize
    cost = pl.CostEstimate(
        flops=2 * N * HW * C_in * C_out,
        transcendentals=0,
        bytes_accessed=(N * C_in * HW + C_out * C_in + N * C_out * HW) * itemsize,
    )

    out3d = pl.pallas_call(
        _conv1x1_kernel,
        out_shape=jax.ShapeDtypeStruct((N, C_out, HW), x_nchw.dtype),
        grid_spec=pltpu.PrefetchScalarGridSpec(
            num_scalar_prefetch=0,
            grid=grid,
            in_specs=[
                # Tiny weight, resident across the whole grid.
                pl.BlockSpec((C_out, C_in), lambda n, j: (0, 0)),
                # Activation tile: C_in on sublanes, spatial tile on lanes.
                pl.BlockSpec((None, C_in, ts), lambda n, j: (n, 0, j)),
            ],
            out_specs=pl.BlockSpec((None, C_out, ts), lambda n, j: (n, 0, j)),
        ),
        compiler_params=pltpu.CompilerParams(
            dimension_semantics=("parallel", "parallel"),
        ),
        cost_estimate=cost,
    )(weight_oc, x3d)

    # Free reshape back to NCHW.
    return out3d.reshape(N, C_out, H, W)
    # Note: casting x/weight to bf16 (keeping f32 MXU accumulation) would ~halve
    # HBM traffic; kept f32 here to match the PyTorch module's numerics exactly.


# ------------------------- deterministic param init -------------------------
def init_center_weight(k_depth=675, num_channels=1, dtype=jnp.float32):
    """Replicates IlluminationLayer.init_center():
    weight[0, i] = 1 if i % 225 == 0 else 0, for i in range(675)."""
    w = np.zeros((num_channels, k_depth), dtype=np.float32)
    for i in range(k_depth):
        if i % 225 == 0:
            w[0, i] = 1.0
    return jnp.asarray(w, dtype=dtype)
    # TODO(synk): 'off_axis'/'dpc'/'brightfield' init strategies depend on the
    # external to_spiral/from_spiral helpers not provided in modules.py; only
    # the spiral-free 'center' strategy is reproduced here.


# ---------------------------------- main -------------------------------------
if __name__ == "__main__":
    key = jax.random.PRNGKey(0)

    # Shapes implied by the module: k_depth = 675 LED channels (3 * 15 * 15),
    # num_channels = 1 output channel; small batch / spatial for the demo.
    N, C_IN, H, W = 2, 675, 8, 8
    C_OUT = 1

    x = jax.random.normal(key, (N, C_IN, H, W), dtype=jnp.float32)
    weight = init_center_weight(k_depth=C_IN, num_channels=C_OUT)

    out = illumination_forward(x, weight)
    out = jax.block_until_ready(out)

    # Reference (plain JAX) 1x1 conv for a correctness check.
    ref = jnp.einsum("oc,nchw->nohw", weight, x)
    assert out.shape == (N, C_OUT, H, W)
    np.testing.assert_allclose(np.asarray(out), np.asarray(ref), rtol=1e-5, atol=1e-5)

    print("KERNEL_OK")
</pallas_src>

<mosaic_0001>
module attributes {stable_mosaic.version = 11 : i64} {
  func.func @_conv1x1_kernel(%arg0: i32, %arg1: i32, %arg2: memref<1x675xf32, #tpu.memory_space<vmem>>, %arg3: memref<1x675x64xf32, #tpu.memory_space<vmem>>, %arg4: memref<1x1x64xf32, #tpu.memory_space<vmem>>) attributes {dimension_semantics = [#tpu.dimension_semantics<parallel>, #tpu.dimension_semantics<parallel>], iteration_bounds = array<i64: 2, 1>, scalar_prefetch = 0 : i64, scratch_operands = 0 : i64, tpu.core_type = #tpu.core_type<tc>, window_params = [{pipeline_mode = #tpu.pipeline_mode<synchronous>, transform_indices = @transform_0, window_bounds = array<i64: 1, 675>}, {transform_indices = @transform_1, window_bounds = array<i64: 1, 675, 64>}, {transform_indices = @transform_2, window_bounds = array<i64: 1, 1, 64>}]} {
    %c0 = arith.constant 0 : index
    %c0_0 = arith.constant 0 : index
    %0 = vector.load %arg2[%c0, %c0_0] : memref<1x675xf32, #tpu.memory_space<vmem>>, vector<1x675xf32>
    %c0_1 = arith.constant 0 : index
    %c0_2 = arith.constant 0 : index
    %c0_3 = arith.constant 0 : index
    %1 = vector.load %arg3[%c0_1, %c0_2, %c0_3] : memref<1x675x64xf32, #tpu.memory_space<vmem>>, vector<1x675x64xf32>
    %2 = vector.shape_cast %1 : vector<1x675x64xf32> to vector<675x64xf32>
    %cst = arith.constant dense<0.000000e+00> : vector<1x64xf32>
    %3 = tpu.matmul %0, %2, %cst {dimension_numbers = #tpu.dot_dimension_numbers<[1], [0], [0], [1], [0, 0, 1, 1], [], []>} : vector<1x675xf32>, vector<675x64xf32>, vector<1x64xf32> -> vector<1x64xf32>
    %c0_4 = arith.constant 0 : index
    %c0_5 = arith.constant 0 : index
    %c0_6 = arith.constant 0 : index
    %4 = vector.load %arg4[%c0_4, %c0_5, %c0_6] : memref<1x1x64xf32, #tpu.memory_space<vmem>>, vector<1x1x64xf32>
    %5 = vector.shape_cast %4 : vector<1x1x64xf32> to vector<1x64xf32>
    %6 = vector.shape_cast %3 : vector<1x64xf32> to vector<1x1x64xf32>
    tpu.vector_store %arg4[%c0_4, %c0_5, %c0_6], %6 {strides = array<i32>} : memref<1x1x64xf32, #tpu.memory_space<vmem>>, vector<1x1x64xf32>,
    return
  }
  func.func @transform_0(%arg0: i32, %arg1: i32) -> (i32, i32) {
    %c0_i32 = arith.constant 0 : i32
    %c0_i32_0 = arith.constant 0 : i32
    %c0_i32_1 = arith.constant 0 : i32
    return %c0_i32, %c0_i32_0 : i32, i32
  }
  func.func @transform_1(%arg0: i32, %arg1: i32) -> (i32, i32, i32) {
    %c0_i32 = arith.constant 0 : i32
    %c0_i32_0 = arith.constant 0 : i32
    return %arg0, %c0_i32, %arg1 : i32, i32, i32
  }
  func.func @transform_2(%arg0: i32, %arg1: i32) -> (i32, i32, i32) {
    %c0_i32 = arith.constant 0 : i32
    %c0_i32_0 = arith.constant 0 : i32
    return %arg0, %c0_i32, %arg1 : i32, i32, i32
  }
}

</mosaic_0001>

<bundles_post_ra>
// kernel: tpu_custom_call.1
= control target key start
LH: loop header
LB: loop body
LE: loop exit
PB: predicated region body
PF: predicated region fallthrough
CT: control target
= control target key end

     0   :  { %7 = vsyncpa [#allocation3], 0  ;;  %s1047_s0 = inlined_call_operand.vmem [shape: f32[1,675], index: 0, kind: input, shape index: {}]   ;;  %s1048_s1 = inlined_call_operand.vmem [shape: f32[2,675,64], index: 1, kind: input, shape index: {}]   ;;  %s1049_s2 = inlined_call_operand.hbm [shape: f32[2,1,64], index: 2, kind: output, shape index: {}]  }
   0x1   :  { %9 = vsyncpa [#allocation3 + $0x1], 0  ;;  %s818_s9 = smov 0   ;;  %s820_s10 = smov 0  }
   0x2   :  { %s822_s11 = smov 0   ;;  %s824_s12 = smov 0  }
   0x3   :  { %s826_s13 = smov 0   ;;  %s828_s14 = smov 0  }
   0x4 LB: > { %s585_s15 = sadd.s32 4294967295, %s799_s14   ;;  %s586_s16 = sadd.s32 4294967294, %s799_s14   ;;  %s799_s14 = sphi %s828_s14, %s15_s14   ;;  %s795_s13 = sphi %s826_s13, %s1056_s13   ;;  %s791_s12 = sphi %s824_s12, %s1055_s12   ;;  %s787_s11 = sphi %s822_s11, %s1054_s11   ;;  %s783_s10 = sphi %s820_s10, %s1053_s10   ;;  %s779_s9 = sphi %s818_s9, %s1052_s9  }
   0x5   : > { %s27_s17 = sadd.s32 1, %s795_s13  ;;  %s85_s18 = sadd.s32 1, %s787_s11 }
   0x6   : > { %p29_p0 = scmp.ge.s32.totalorder %s27_s17, 2  ;;  %p95_p1 = scmp.ne.s32.totalorder %s787_s11, %s783_s10 }
   0x7   : > { %p96_p2 = scmp.eq.s32.totalorder %s585_s15, 1  ;;  %p101_p3 = scmp.ne.s32.totalorder %s783_s10, %s779_s9 }
   0x8   : > { %s1058_s17 = smov (%p29_p0, %s27_s17), 0  ;;  %p102_p5 = scmp.eq.s32.totalorder %s586_s16, 1 }
   0x9   : > { %p858_p4 = por %p96_p2, %p95_p1  ;;  %s80_s20 = ssub.s32 %s795_s13, %s1058_s17 }
   0xa   : > { %p589_p6 = scmp.ge.s32.totalorder %s799_s14, 1  ;;  %p83_p7 = scmp.eq.s32.totalorder %s80_s20, 0 }
   0xb   : > { %p865_p8 = por %p102_p5, %p101_p3  ;;  %p134_p9 = scmp.lt.s32.totalorder %s799_s14, 3 }
   0xc   : > { %s871_s22 = scalar_select %p83_p7, %s787_s11, %s85_s18  }
   0xd   : > { %p135_p10 = pnand %p589_p6, %p134_p9 }
   0xe   : > { %p158_p11 = scmp.lt.s32.totalorder (!%p135_p10), %s791_s12, 1  ;;  %s156_s30 = sand.u32 (!%p135_p10), 1, %s783_s10  }
   0xf   : > { %138 = sbr.rel (%p135_p10) target bundleno = 305 (0x131), region = 28  ;;  %s593_s3 = sshll.u32 (!%p135_p10), %s791_s12, 4 }
  0x10   : > { %s157_s4 = scalar_lea.vmem (!%p135_p10), [#allocation2], %s156_s30  ;;  %s513_s8 = scalar_lea.hbm (!%p135_p10), %s1049_s2, %s593_s3 }
  0x11   : > { %s515_s5 = sshll.u32 (!%p135_p10), %s157_s4, 4  ;;  %s502_s15 = scalar_lea.sflag (!%p135_p10), [#allocation3], %s156_s30  ;;  %s516_s5 = int_to_ptr.vmem [resolvable:$true] %s515_s5 }
  0x12   : > { %s723_s16 = scalar_lea.vmem (!%p135_p10), %s516_s5, 16  ;;  %s802_s18 = smov (!%p135_p10), [#allocation2]  }
  0x13   : > { %p724_p12 = scmp.ne.s32.totalorder (!%p135_p10), %s516_s5, %s723_s16  ;;  %s727_s20 = sshll.u32 (!%p135_p10), %s802_s18, 4  ;;  %s728_s20 = int_to_ptr.vmem [resolvable:$false] %s727_s20 }
  0x14   : > { %v253_v0 = vlaneseq  ;;  %v801_v1 = vmov 0.0   ;;  %s159_s23 = scalar_select %p158_p11, %s791_s12, 1  ;;  %v881_v3 = vld [vmem:[%s1047_s0] sm:$0x3f]  ;;  %vm282_vm0 = vcmask 285696   ;;  %vm285_vm1 = vcmask 1042432  }
  0x15   : > { %429 = vmatprep.subr.mxu0 %v801_v1  ;;  %vm499_vm2 = vcmask 516096   ;;  %p725_p13 = pnand %p724_p12, %p858_p4  ;;  %s729_s12 = scalar_lea.vmem %s728_s20, 32 }
  0x16   : > { %v876_v2 = vshrl.u32 %v253_v0, 7  ;;  %s666_s26 = smul.u32 680, %s159_s23  ;;  %p730_p1 = scmp.lt.s32.totalorder %s516_s5, %s728_s20 }
  0x17   : > { %p726_p0 = pneg %p725_p13  ;;  %p731_p2 = scmp.lt.s32.totalorder %s729_s12, %s723_s16 }
  0x18   : > { %v259_v4 = vsub.s32 1, %v876_v2  ;;  %v263_v5 = vsub.s32 2, %v876_v2  ;;  %v275_v6 = vsub.s32 5, %v876_v2  ;;  %s889_s29 = scalar_lea.vmem %s1048_s1, %s666_s26  ;;  %v255_v47 = vsub.s32 0, %v876_v2 }
  0x19   : > { %v198_v9 = vld [vmem:[%s889_s29 + $0xf8] sm:$0xff]  ;;  %v197_v11 = vld [vmem:[%s889_s29 + $0xf0] sm:$0xff]  ;;  %v196_v14 = vld [vmem:[%s889_s29 + $0xe8] sm:$0xff]  ;;  %p732_p3 = por %p731_p2, %p730_p1 }
  0x1a   : > { %v260_v7 = vrot.slane %v881_v3, %v259_v4  ;;  %v893_v8 = vrot.slane %v881_v3, %v263_v5  ;;  %v182_v10 = vld [vmem:[%s889_s29 + $0x78] sm:$0xff]  ;;  %v276_v12 = vrot.slane %v881_v3, %v275_v6  ;;  %596 = vmatprep.subr.mxu1 %v198_v9  ;;  %v181_v13 = vld [vmem:[%s889_s29 + $0x70] sm:$0xff]  ;;  %v180_v15 = vld [vmem:[%s889_s29 + $0x68] sm:$0xff]  ;;  %v256_v54 = vrot.slane %v881_v3, %v255_v47 }
  0x1b   : > { %597 = vmatpush3.msra.mxu1 %v182_v10  ;;  %v195_v16 = vld [vmem:[%s889_s29 + $0xe0] sm:$0xff]  ;;  %v194_v18 = vld [vmem:[%s889_s29 + $0xd8] sm:$0xff]  ;;  %v193_v20 = vld [vmem:[%s889_s29 + $0xd0] sm:$0xff]  ;;  %v267_v10 = vsub.s32 3, %v876_v2  ;;  %p733_p5 = pnand %p732_p3, %p726_p0 }
  0x1c   : > { %353 = vmatprep.mubr.f32.mxu1 %v260_v7  ;;  %592 = vmatprep.mubr.msk.f32.mxu0 %vm282_vm0, %v276_v12  ;;  %v179_v17 = vld [vmem:[%s889_s29 + $0x60] sm:$0xff]  ;;  %v178_v19 = vld [vmem:[%s889_s29 + $0x58] sm:$0xff]  ;;  %v177_v21 = vld [vmem:[%s889_s29 + $0x50] sm:$0xff] }
  0x1d   : > { %598 = vmatprep.subr.mxu1 %v197_v11  ;;  %v246_v22 = vld [vmem:[%s889_s29 + $0x278] sm:$0xff]  ;;  %v192_v23 = vld [vmem:[%s889_s29 + $0xc8] sm:$0xff]  ;;  %v245_v24 = vld [vmem:[%s889_s29 + $0x270] sm:$0xff] }
  0x1e   : > { %599 = vmatpush3.msra.mxu1 %v181_v13  ;;  %430 = vmatpush1.msra.mxu0 %v246_v22  ;;  %v176_v25 = vld [vmem:[%s889_s29 + $0x48] sm:$0xff]  ;;  %v191_v27 = vld [vmem:[%s889_s29 + $0xc0] sm:$0xff]  ;;  %v190_v30 = vld [vmem:[%s889_s29 + $0xb8] sm:$0xff] }
  0x1f   : > { %600 = vmatprep.subr.mxu1 %v196_v14  ;;  %431 = vmatprep.subr.mxu0 %v801_v1  ;;  %v244_v26 = vld [vmem:[%s889_s29 + $0x268] sm:$0xff]  ;;  %v175_v28 = vld [vmem:[%s889_s29 + $0x40] sm:$0xff]  ;;  %v174_v31 = vld [vmem:[%s889_s29 + $0x38] sm:$0xff] }
  0x20   : > { %601 = vmatpush3.msra.mxu1 %v180_v15  ;;  %432 = vmatpush1.msra.mxu0 %v245_v24  ;;  %v243_v29 = vld [vmem:[%s889_s29 + $0x260] sm:$0xff]  ;;  %v242_v32 = vld [vmem:[%s889_s29 + $0x258] sm:$0xff]  ;;  %v189_v33 = vld [vmem:[%s889_s29 + $0xb0] sm:$0xff] }
  0x21   : > { %602 = vmatprep.subr.mxu1 %v195_v16  ;;  %433 = vmatprep.subr.mxu0 %v801_v1  ;;  %v173_v34 = vld [vmem:[%s889_s29 + $0x30] sm:$0xff]  ;;  %v188_v36 = vld [vmem:[%s889_s29 + $0xa8] sm:$0xff]  ;;  %v187_v39 = vld [vmem:[%s889_s29 + $0xa0] sm:$0xff] }
  0x22   : > { %603 = vmatpush3.msra.mxu1 %v179_v17  ;;  %434 = vmatpush1.msra.mxu0 %v244_v26  ;;  %v241_v35 = vld [vmem:[%s889_s29 + $0x250] sm:$0xff]  ;;  %v172_v37 = vld [vmem:[%s889_s29 + $0x28] sm:$0xff]  ;;  %v171_v40 = vld [vmem:[%s889_s29 + $0x20] sm:$0xff]  ;;  %v268_v17 = vrot.slane %v881_v3, %v267_v10 }
  0x23   : > { %604 = vmatprep.subr.mxu1 %v194_v18  ;;  %435 = vmatprep.subr.mxu0 %v801_v1  ;;  %v240_v38 = vld [vmem:[%s889_s29 + $0x248] sm:$0xff]  ;;  %v239_v41 = vld [vmem:[%s889_s29 + $0x240] sm:$0xff]  ;;  %v186_v42 = vld [vmem:[%s889_s29 + $0x98] sm:$0xff] }
  0x24   : > { %605 = vmatpush3.msra.mxu1 %v178_v19  ;;  %436 = vmatpush1.msra.mxu0 %v243_v29  ;;  %v170_v43 = vld [vmem:[%s889_s29 + $0x18] sm:$0xff]  ;;  %v185_v45 = vld [vmem:[%s889_s29 + $0x90] sm:$0xff]  ;;  %v184_v49 = vld [vmem:[%s889_s29 + $0x88] sm:$0xff] }
  0x25   : > { %606 = vmatprep.subr.mxu1 %v193_v20  ;;  %437 = vmatprep.subr.mxu0 %v801_v1  ;;  %v238_v44 = vld [vmem:[%s889_s29 + $0x238] sm:$0xff]  ;;  %v169_v46 = vld [vmem:[%s889_s29 + $0x10] sm:$0xff]  ;;  %v168_v50 = vld [vmem:[%s889_s29 + $0x8] sm:$0xff] }
  0x26   : > { %607 = vmatpush3.msra.mxu1 %v177_v21  ;;  %438 = vmatpush1.msra.mxu0 %v242_v32  ;;  %v237_v48 = vld [vmem:[%s889_s29 + $0x230] sm:$0xff]  ;;  %v236_v51 = vld [vmem:[%s889_s29 + $0x228] sm:$0xff]  ;;  %v183_v52 = vld [vmem:[%s889_s29 + $0x80] sm:$0xff]  ;;  %v271_v21 = vsub.s32 4, %v876_v2 }
  0x27   : > { %608 = vmatprep.subr.mxu1 %v192_v23  ;;  %439 = vmatprep.subr.mxu0 %v801_v1  ;;  %v167_v53 = vld [vmem:[%s889_s29] sm:$0xff]  ;;  %v230_v56 = vld [vmem:[%s889_s29 + $0x1f8] sm:$0xff]  ;;  %v229_v58 = vld [vmem:[%s889_s29 + $0x1f0] sm:$0xff] }
  0x28   : > { %609 = vmatpush3.msra.mxu1 %v176_v25  ;;  %440 = vmatpush1.msra.mxu0 %v241_v35  ;;  %v235_v55 = vld [vmem:[%s889_s29 + $0x220] sm:$0xff]  ;;  %v214_v57 = vld [vmem:[%s889_s29 + $0x178] sm:$0xff]  ;;  %v213_v60 = vld [vmem:[%s889_s29 + $0x170] sm:$0xff] }
  0x29   : > { %610 = vmatprep.subr.mxu1 %v191_v27  ;;  %441 = vmatprep.subr.mxu0 %v801_v1  ;;  %v234_v59 = vld [vmem:[%s889_s29 + $0x218] sm:$0xff]  ;;  %v228_v61 = vld [vmem:[%s889_s29 + $0x1e8] sm:$0xff]  ;;  %v233_v62 = vld [vmem:[%s889_s29 + $0x210] sm:$0xff]  ;;  %v272_v27 = vrot.slane %v881_v3, %v271_v21 }
  0x2a   : > { %611 = vmatpush3.msra.mxu1 %v175_v28  ;;  %442 = vmatpush1.msra.mxu0 %v240_v38  ;;  %v212_v63 = vld [vmem:[%s889_s29 + $0x168] sm:$0xff]  ;;  %v227_v0 = vld [vmem:[%s889_s29 + $0x1e0] sm:$0xff]  ;;  %v226_v6 = vld [vmem:[%s889_s29 + $0x1d8] sm:$0xff] }
  0x2b   : > { %612 = vmatprep.subr.mxu1 %v190_v30  ;;  %443 = vmatprep.subr.mxu0 %v801_v1  ;;  %v232_v4 = vld [vmem:[%s889_s29 + $0x208] sm:$0xff]  ;;  %v211_v5 = vld [vmem:[%s889_s29 + $0x160] sm:$0xff]  ;;  %v210_v9 = vld [vmem:[%s889_s29 + $0x158] sm:$0xff] }
  0x2c   : > { %613 = vmatpush3.msra.mxu1 %v174_v31  ;;  %444 = vmatpush1.msra.mxu0 %v239_v41  ;;  %v231_v7 = vld [vmem:[%s889_s29 + $0x200] sm:$0xff]  ;;  %v225_v11 = vld [vmem:[%s889_s29 + $0x1d0] sm:$0xff]  ;;  %v224_v14 = vld [vmem:[%s889_s29 + $0x1c8] sm:$0xff] }
  0x2d   : > { %614 = vmatprep.subr.mxu1 %v189_v33  ;;  %445 = vmatprep.subr.mxu0 %v801_v1  ;;  %v251_v12 = vld [vmem:[%s889_s29 + $0x2a0] sm:$0x7]  ;;  %v209_v13 = vld [vmem:[%s889_s29 + $0x150] sm:$0xff]  ;;  %v250_v15 = vld [vmem:[%s889_s29 + $0x298] sm:$0xff] }
  0x2e   : > { %615 = vmatpush3.msra.mxu1 %v173_v34  ;;  %446 = vmatpush1.msra.mxu0 %v238_v44  ;;  %v208_v16 = vld [vmem:[%s889_s29 + $0x148] sm:$0xff]  ;;  %v223_v18 = vld [vmem:[%s889_s29 + $0x1c0] sm:$0xff]  ;;  %v249_v20 = vld [vmem:[%s889_s29 + $0x290] sm:$0xff] }
  0x2f   : > { %616 = vmatprep.subr.mxu1 %v188_v36  ;;  %447 = vmatprep.subr.mxu0 %v801_v1  ;;  %v207_v19 = vld [vmem:[%s889_s29 + $0x140] sm:$0xff]  ;;  %v222_v22 = vld [vmem:[%s889_s29 + $0x1b8] sm:$0xff]  ;;  %v248_v24 = vld [vmem:[%s889_s29 + $0x288] sm:$0xff] }
  0x30   : > { %617 = vmatpush3.msra.mxu1 %v172_v37  ;;  %448 = vmatpush1.msra.mxu0 %v237_v48  ;;  %v206_v23 = vld [vmem:[%s889_s29 + $0x138] sm:$0xff]  ;;  %v221_v25 = vld [vmem:[%s889_s29 + $0x1b0] sm:$0xff]  ;;  %v247_v2 = vld [vmem:[%s889_s29 + $0x280] sm:$0xff] }
  0x31   : > { %618 = vmatprep.subr.mxu1 %v187_v39  ;;  %449 = vmatprep.subr.mxu0 %v801_v1  ;;  %v205_v26 = vld [vmem:[%s889_s29 + $0x130] sm:$0xff]  ;;  %v220_v28 = vld [vmem:[%s889_s29 + $0x1a8] sm:$0xff]  ;;  %v219_v30 = vld [vmem:[%s889_s29 + $0x1a0] sm:$0xff] }
  0x32   : > { %619 = vmatpush3.msra.mxu1 %v171_v40  ;;  %450 = vmatpush1.msra.mxu0 %v236_v51  ;;  %v204_v29 = vld [vmem:[%s889_s29 + $0x128] sm:$0xff]  ;;  %v203_v31 = vld [vmem:[%s889_s29 + $0x120] sm:$0xff]  ;;  %v218_v3 = vld [vmem:[%s889_s29 + $0x198] sm:$0xff] }
  0x33   : > { %620 = vmatprep.subr.mxu1 %v186_v42  ;;  %451 = vmatprep.subr.mxu0 %v801_v1  ;;  %v202_v32 = vld [vmem:[%s889_s29 + $0x118] sm:$0xff]  ;;  %v217_v33 = vld [vmem:[%s889_s29 + $0x190] sm:$0xff]  ;;  %v200_v35 = vld [vmem:[%s889_s29 + $0x108] sm:$0xff] }
  0x34   : > { %621 = vmatpush3.msra.mxu1 %v170_v43  ;;  %452 = vmatpush1.msra.mxu0 %v235_v55  ;;  %v201_v34 = vld [vmem:[%s889_s29 + $0x110] sm:$0xff]  ;;  %v215_v36 = vld [vmem:[%s889_s29 + $0x180] sm:$0xff] }
  0x35   : > { %622 = vmatprep.subr.mxu1 %v185_v45  ;;  %453 = vmatprep.subr.mxu0 %v801_v1  ;;  %v199_v37 = vld [vmem:[%s889_s29 + $0x100] sm:$0xff] }
  0x36   : > { %623 = vmatpush3.msra.mxu1 %v169_v46  ;;  %454 = vmatpush1.msra.mxu0 %v234_v59 }
  0x37   : > { %624 = vmatprep.subr.mxu1 %v184_v49  ;;  %455 = vmatprep.subr.mxu0 %v801_v1 }
  0x38   : > { %625 = vmatpush3.msra.mxu1 %v168_v50  ;;  %456 = vmatpush1.msra.mxu0 %v233_v62 }
  0x39   : > { %626 = vmatprep.subr.mxu1 %v183_v52  ;;  %457 = vmatprep.subr.mxu0 %v801_v1 }
  0x3a   : > { %627 = vmatpush3.msra.mxu1 %v167_v53  ;;  %458 = vmatpush1.msra.mxu0 %v232_v4 }
  0x3b   : > { %354 = vmatmul.mubr.f32.vlgmr.msra.gmra.mxu1 %v256_v54  ;;  %631 = vmatprep.subr.mxu1 %v230_v56 }
  0x3c   : > { %632 = vmatpush3.msra.mxu1 %v214_v57  ;;  %459 = vmatprep.subr.mxu0 %v801_v1 }
  0x3d   : > { %633 = vmatprep.subr.mxu1 %v229_v58  ;;  %460 = vmatpush1.msra.mxu0 %v231_v7 }
  0x3e   : > { %634 = vmatpush3.msra.mxu1 %v213_v60  ;;  %483 = vmatprep.subr.mxu0 %v801_v1 }
  0x3f   : > { %635 = vmatprep.subr.mxu1 %v228_v61  ;;  %591 = vmatpush2.msk.msra.mxu0 %vm285_vm1, %v251_v12 }
  0x40   : > { %636 = vmatpush3.msra.mxu1 %v212_v63  ;;  %485 = vmatprep.subr.mxu0 %v801_v1 }
  0x41   : > { %637 = vmatprep.subr.mxu1 %v227_v0  ;;  %486 = vmatpush2.msra.mxu0 %v250_v15 }
  0x42   : > { %638 = vmatpush3.msra.mxu1 %v211_v5  ;;  %487 = vmatprep.subr.mxu0 %v801_v1 }
  0x43   : > { %639 = vmatprep.subr.mxu1 %v226_v6  ;;  %423 = vmatprep.mubr.f32.mxu1 %v268_v17 }
  0x44   : > { %640 = vmatpush3.msra.mxu1 %v210_v9  ;;  %488 = vmatpush2.msra.mxu0 %v249_v20 }
  0x45   : > { %641 = vmatprep.subr.mxu1 %v225_v11  ;;  %489 = vmatprep.subr.mxu0 %v801_v1 }
  0x46   : > { %642 = vmatpush3.msra.mxu1 %v209_v13  ;;  %490 = vmatpush2.msra.mxu0 %v248_v24 }
  0x47   : > { %643 = vmatprep.subr.mxu1 %v224_v14  ;;  %491 = vmatprep.subr.mxu0 %v801_v1  ;;  %v216_v1 = vld [vmem:[%s889_s29 + $0x188] sm:$0xff] }
  0x48   : > { %644 = vmatpush3.msra.mxu1 %v208_v16  ;;  %492 = vmatpush2.msra.mxu0 %v247_v2 }
  0x49   : > { %645 = vmatprep.subr.mxu1 %v223_v18  ;;  %494 = vmatmul.mubr.f32.vlgmr.msra.gmra.mxu0 %v272_v27 }
  0x4a   : > { %646 = vmatpush3.msra.mxu1 %v207_v19 }
  0x4b   : > { %647 = vmatprep.subr.mxu1 %v222_v22 }
  0x4c   : > { %648 = vmatpush3.msra.mxu1 %v206_v23 }
  0x4d   : > { %649 = vmatprep.subr.mxu1 %v221_v25 }
  0x4e   : > { %650 = vmatpush3.msra.mxu1 %v205_v26 }
  0x4f   : > { %651 = vmatprep.subr.mxu1 %v220_v28 }
  0x50   : > { %652 = vmatpush3.msra.mxu1 %v204_v29 }
  0x51   : > { %653 = vmatprep.subr.mxu1 %v219_v30 }
  0x52   : > { %654 = vmatpush3.msra.mxu1 %v203_v31 }
  0x53   : > { %655 = vmatprep.subr.mxu1 %v218_v3 }
  0x54   : > { %656 = vmatpush3.msra.mxu1 %v202_v32 }
  0x55   : > { %657 = vmatprep.subr.mxu1 %v217_v33 }
  0x56   : > { %658 = vmatpush3.msra.mxu1 %v201_v34 }
  0x57   : > { %659 = vmatprep.subr.mxu1 %v216_v1 }
  0x58   : > { %660 = vmatpush3.msra.mxu1 %v200_v35 }
  0x59   : > { %661 = vmatprep.subr.mxu1 %v215_v36 }
  0x5a   : > { %662 = vmatpush3.msra.mxu1 %v199_v37 }
  0x5b   : > { %424 = vmatmul.mubr.f32.vlgmr.msra.gmra.mxu1 %v893_v8 }
  0xfb   : > { %v628_v40 = vpop.f32.mrf.mxu1 }
  0xfd   : > { %v629_v41 = vpop.f32.mrf.mxu1 }
  0xfe   : > { %v630_v44 = vadd.f32 %v629_v41, %v628_v40 }
 0x109   : > { %v495_v38 = vpop.f32.mrf.mxu0 }
 0x10b   : > { %v497_v39 = vpop.f32.mrf.mxu0 }
 0x11b   : > { %v663_v42 = vpop.f32.mrf.mxu1 }
 0x11d   : > { %v664_v43 = vpop.f32.mrf.mxu1 }
 0x11e   : > { %v665_v45 = vadd.f32 %v664_v43, %v663_v42 }
 0x120   : > { %v426_v46 = vadd.f32 %v665_v45, %v630_v44 }
 0x122   : > { %v496_v47 = vadd.f32 %v495_v38, %v426_v46 }
 0x124   : > { %500 = vst.msk [vmem:[%s157_s4] sm:$0x1] %vm499_vm2, %v496_v47 }
 0x125   : > { %736 = shalt.err (!%p733_p5)
}
 0x126   : > { %s737_s23 = scalar_lea.hbm %s513_s8, 16  ;;  %s741_s26 = scalar_lea.hbm %s1049_s2, 32 }
 0x127   : > { %p738_p6 = scmp.ne.s32.totalorder %s513_s8, %s737_s23  ;;  %p742_p10 = scmp.lt.s32.totalorder %s513_s8, %s1049_s2 }
 0x128   : > { %p743_p11 = scmp.lt.s32.totalorder %s741_s26, %s737_s23 }
 0x129   : > { %p739_p7 = pnand %p738_p6, %p858_p4 }
 0x12a   : > { %p744_p12 = por %p743_p11, %p742_p10 }
 0x12b   : > { %p740_p9 = pneg %p739_p7 }
 0x12d   : > { %p745_p13 = pnand %p744_p12, %p740_p9 }
 0x12f   : > { %748 = shalt.err (!%p745_p13)
}
 0x130   : > { %667 = dma.vmem_to_hbm [thread:$0]  (%p858_p4), %s516_s5, 16, %s513_s8, %s502_s15  }
 0x131 PF: > { %p673_p0 = scmp.ge.s32.totalorder %s799_s14, 2  ;;  %s527_s29 = sand.u32 1, %s779_s9  }
 0x132   : > { %s528_s30 = scalar_lea.sflag [#allocation3], %s527_s29 }
 0x133   : > { %p670_p1 = pnand %p673_p0, %p865_p8 }
 0x135   : > { %p671_p2 = pneg %p670_p1 }
 0x137   : > { %774 = dma.done.wait (%p671_p2), %s528_s30, 16  }
 0x138   : > { %776 = vsyncadd (%p671_p2), %s528_s30, 4294967280  ;;  %s15_s14 = sadd.s32 1, %s799_s14   ;;  %s1052_s9 = smov %s783_s10 }
 0x139   : > { %p12_p3 = scmp.ge.s32.totalorder %s15_s14, 4   ;;  %s1053_s10 = smov %s787_s11 }
 0x13a   : > { %s1054_s11 = smov %s871_s22  ;;  %s1055_s12 = smov %s795_s13 }
 0x13b   : > { %s1056_s13 = smov %s1058_s17  ;;  %14 = sbr.rel (!%p12_p3) target bundleno = 4 (0x4), region = 63 }
 0x140   :  { %532 = vsyncpa [#allocation3], 1 }
 0x141   :  { %534 = vsyncpa [#allocation3 + $0x1], 1 }

</bundles_post_ra>
